<compile_context>
chip_gen: v7x
topology: tpu7x:2x2x1
jax: 0.10.0
libtpu: 0.0.40
codegen_flags: <defaults>
</compile_context>

<pallas_src>
import math

import jax
import jax.numpy as jnp
from jax.experimental import pallas as pl
from jax.experimental.pallas import tpu as pltpu


def _normalize_kernel(x_ref, mean_ref, inv_std_ref, o_ref):
    # One (tile_rows, lane) lane-dense tile:  out = (x - mean*max) * 1/(std*max).
    # NOTE: on the ragged last block the padded rows contain garbage; that is benign for
    # this affine op (no exp/log/div-by-data) and the partial store is masked by Pallas.
    x = x_ref[...].astype(jnp.float32)
    o_ref[...] = ((x - mean_ref[...]) * inv_std_ref[...]).astype(o_ref.dtype)


def _sublane_multiple(dtype):
    itemsize = jnp.dtype(dtype).itemsize
    if itemsize == 1:
        return 32
    if itemsize == 2:
        return 16
    return 8


def _round_up(x, m):
    return -(-x // m) * m


def _num_tensorcores():
    # Best-effort generation detection; only v7x has 2 TensorCores per chip.
    try:
        kind = jax.devices()[0].device_kind.lower()
        return 2 if "v7" in kind else 1
    except Exception:
        return 1


def albumentations_adapter_forward(
    x,
    mean,
    std,
    max_pixel_value=255.0,
    out_dtype=jnp.float32,
    vmem_budget_bytes=16 * 1024 * 1024,  # budget for pipelined (2x in + 2x out) buffers
):
    """Pallas implementation of AlbumentationsAdapter(Normalize(mean, std)).forward.

    Args:
      x:    (H, W, C) image, uint8 or float.
      mean: (C,) per-channel mean (albumentations convention, values in [0, 1]).
      std:  (C,) per-channel std.
      out_dtype: output dtype (float32 matches albumentations; bf16 halves write traffic).
    """
    H, W, C = x.shape
    WC = W * C

    # --- Lane-dense folding: make the lane dim a multiple of 128 when H allows it. ----
    k = 128 // math.gcd(WC, 128)
    if k > 1 and H % k == 0:
        rows, lane = H // k, k * WC
    else:
        k, rows, lane = 1, H, WC

    x2 = x.reshape(rows, lane)

    # albumentations.Normalize precomputes  mean*max  and  1/(std*max);
    # tile them across the folded row so they line up with the (rows, lane) layout.
    mean_row = jnp.tile(mean.astype(jnp.float32) * max_pixel_value, W * k).reshape(1, lane)
    inv_std_row = jnp.tile(
        1.0 / (std.astype(jnp.float32) * max_pixel_value), W * k
    ).reshape(1, lane)

    # --- Tile-size / step-count selection ---------------------------------------------
    in_bytes = jnp.dtype(x.dtype).itemsize
    out_bytes = jnp.dtype(out_dtype).itemsize
    sub = max(_sublane_multiple(x.dtype), _sublane_multiple(out_dtype))

    lane_p = _round_up(lane, 128)                      # vreg lane padding
    row_bytes = lane_p * (in_bytes + out_bytes) * 2    # double-buffered in + out per row
    param_bytes = 2 * 2 * 8 * lane_p * 4               # 2 slabs x 2 buffers x (8, lane_p) f32

    budget = max(vmem_budget_bytes - param_bytes, row_bytes * sub)
    max_rows = max(sub, budget // row_bytes)

    num_tc = _num_tensorcores()
    total_io_bytes = rows * lane * (in_bytes + out_bytes)
    # Only force a split when there are 2 TensorCores AND enough traffic to matter;
    # then use >= 4 steps (2 per core) so each core can still double-buffer.
    min_steps = 4 if (num_tc == 2 and total_io_bytes > (4 << 20)) else 1

    num_steps = max(min_steps, pl.cdiv(rows, max_rows))
    if num_tc == 2 and num_steps > 1 and num_steps % 2:
        num_steps += 1                                  # balanced split across the 2 TCs

    tile_rows = _round_up(pl.cdiv(rows, num_steps), sub)
    if tile_rows >= rows:
        tile_rows = rows                                # full block: always legal

    grid = (pl.cdiv(rows, tile_rows),)                  # ragged last block masked by Pallas

    # Explicit VMEM limit: estimated usage (with padding) plus margin, generation-capped.
    tile_rows_p = _round_up(tile_rows, sub)
    est_usage = 2 * tile_rows_p * lane_p * (in_bytes + out_bytes) + param_bytes
    vmem_cap = (48 << 20) if num_tc == 2 else (100 << 20)   # v7x has only 64 MiB physical
    vmem_limit = int(min(max(int(est_usage * 1.3) + (1 << 20), 32 << 20), vmem_cap))

    out2 = pl.pallas_call(
        _normalize_kernel,
        out_shape=jax.ShapeDtypeStruct((rows, lane), out_dtype),
        grid_spec=pltpu.PrefetchScalarGridSpec(
            num_scalar_prefetch=0,
            grid=grid,
            in_specs=[
                # image tile: (tile_rows, lane); last dim equals the full array dim.
                pl.BlockSpec((tile_rows, lane), lambda i: (i, 0)),
                # resident parameter slabs: same block every step -> single DMA.
                pl.BlockSpec((1, lane), lambda i: (0, 0)),
                pl.BlockSpec((1, lane), lambda i: (0, 0)),
            ],
            out_specs=pl.BlockSpec((tile_rows, lane), lambda i: (i, 0)),
        ),
        compiler_params=pltpu.CompilerParams(
            dimension_semantics=("parallel",),
            vmem_limit_bytes=vmem_limit,
        ),
    )(x2, mean_row, inv_std_row)

    # Restore the external (H, W, C) contract.
    return out2.reshape(H, W, C)


def albumentations_adapter_forward_batched(x, mean, std, **kwargs):
    """Batched entry point: (N, H, W, C) images normalized in a single pallas_call."""
    N, H, W, C = x.shape
    out = albumentations_adapter_forward(x.reshape(N * H, W, C), mean, std, **kwargs)
    return out.reshape(N, H, W, C)


def _reference(x, mean, std, max_pixel_value=255.0):
    C = x.shape[-1]
    shape = (1,) * (x.ndim - 1) + (C,)
    m = mean.reshape(shape) * max_pixel_value
    s = std.reshape(shape) * max_pixel_value
    return (x.astype(jnp.float32) - m) / s


if __name__ == "__main__":
    key = jax.random.PRNGKey(0)
    k1, k2, k3, k4 = jax.random.split(key, 4)

    # Deterministic ImageNet Normalize parameters (albumentations defaults).
    mean = jnp.array([0.485, 0.456, 0.406], dtype=jnp.float32)
    std = jnp.array([0.229, 0.224, 0.225], dtype=jnp.float32)

    # --- Test 1: small uint8 HWC image; exercises the 128-multiple lane fold (k=4). ---
    H1, W1, C1 = 64, 32, 3
    x_u8 = jax.random.randint(k1, (H1, W1, C1), 0, 256, dtype=jnp.int32).astype(jnp.uint8)
    out1 = jax.block_until_ready(albumentations_adapter_forward(x_u8, mean, std))
    ref1 = _reference(x_u8, mean, std)
    assert out1.shape == (H1, W1, C1) and out1.dtype == jnp.float32
    assert jnp.allclose(out1, ref1, atol=1e-5, rtol=1e-5)

    # --- Test 2: float32 image with awkward dims (no legal fold, lane < 128), tiny
    #             budget to force a multi-step grid and a ragged last tile. -----------
    H2, W2, C2 = 100, 37, 3
    x_f32 = jax.random.uniform(k2, (H2, W2, C2), dtype=jnp.float32, minval=0.0, maxval=255.0)
    out2 = jax.block_until_ready(
        albumentations_adapter_forward(x_f32, mean, std, vmem_budget_bytes=32 * 1024)
    )
    ref2 = _reference(x_f32, mean, std)
    assert out2.shape == (H2, W2, C2) and out2.dtype == jnp.float32
    assert jnp.allclose(out2, ref2, atol=1e-5, rtol=1e-5)

    # --- Test 3: uint8 image with a small budget so tile_rows is a PARTIAL block; it
    #             must land on the 32-row sublane-packing multiple for the u8 path. ----
    H3, W3, C3 = 256, 64, 3
    x_u8b = jax.random.randint(k3, (H3, W3, C3), 0, 256, dtype=jnp.int32).astype(jnp.uint8)
    out3 = jax.block_until_ready(
        albumentations_adapter_forward(x_u8b, mean, std, vmem_budget_bytes=256 * 1024)
    )
    ref3 = _reference(x_u8b, mean, std)
    assert out3.shape == (H3, W3, C3) and out3.dtype == jnp.float32
    assert jnp.allclose(out3, ref3, atol=1e-5, rtol=1e-5)

    # --- Test 4: batched entry point (N, H, W, C), bf16 output to cut write traffic. --
    N4, H4, W4, C4 = 2, 32, 16, 3
    x_b = jax.random.uniform(k4, (N4, H4, W4, C4), dtype=jnp.float32, minval=0.0, maxval=255.0)
    out4 = jax.block_until_ready(
        albumentations_adapter_forward_batched(x_b, mean, std, out_dtype=jnp.bfloat16)
    )
    ref4 = _reference(x_b, mean, std)
    assert out4.shape == (N4, H4, W4, C4) and out4.dtype == jnp.bfloat16
    assert jnp.allclose(out4.astype(jnp.float32), ref4, atol=2e-2, rtol=2e-2)

    print("KERNEL_OK")
</pallas_src>

<mosaic_0001>
module attributes {stable_mosaic.version = 11 : i64} {
  func.func @_normalize_kernel(%arg0: i32, %arg1: memref<16x384xi8, #tpu.memory_space<vmem>>, %arg2: memref<1x384xf32, #tpu.memory_space<vmem>>, %arg3: memref<1x384xf32, #tpu.memory_space<vmem>>, %arg4: memref<16x384xf32, #tpu.memory_space<vmem>>) attributes {dimension_semantics = [#tpu.dimension_semantics<parallel>], iteration_bounds = array<i64: 1>, scalar_prefetch = 0 : i64, scratch_operands = 0 : i64, tpu.core_type = #tpu.core_type<tc>, window_params = [{transform_indices = @transform_0, window_bounds = array<i64: 16, 384>}, {pipeline_mode = #tpu.pipeline_mode<synchronous>, transform_indices = @transform_1, window_bounds = array<i64: 1, 384>}, {pipeline_mode = #tpu.pipeline_mode<synchronous>, transform_indices = @transform_2, window_bounds = array<i64: 1, 384>}, {transform_indices = @transform_3, window_bounds = array<i64: 16, 384>}]} {
    %c0 = arith.constant 0 : index
    %c0_0 = arith.constant 0 : index
    %0 = vector.load %arg1[%c0, %c0_0] : memref<16x384xi8, #tpu.memory_space<vmem>>, vector<16x384xi8>
    %1 = arith.uitofp %0 : vector<16x384xi8> to vector<16x384xf32>
    %c0_1 = arith.constant 0 : index
    %c0_2 = arith.constant 0 : index
    %2 = vector.load %arg2[%c0_1, %c0_2] : memref<1x384xf32, #tpu.memory_space<vmem>>, vector<1x384xf32>
    %3 = vector.broadcast %2 : vector<1x384xf32> to vector<16x384xf32>
    %4 = arith.subf %1, %3 : vector<16x384xf32>
    %c0_3 = arith.constant 0 : index
    %c0_4 = arith.constant 0 : index
    %5 = vector.load %arg3[%c0_3, %c0_4] : memref<1x384xf32, #tpu.memory_space<vmem>>, vector<1x384xf32>
    %6 = vector.broadcast %5 : vector<1x384xf32> to vector<16x384xf32>
    %7 = arith.mulf %4, %6 : vector<16x384xf32>
    %c0_5 = arith.constant 0 : index
    %c0_6 = arith.constant 0 : index
    %8 = vector.load %arg4[%c0_5, %c0_6] : memref<16x384xf32, #tpu.memory_space<vmem>>, vector<16x384xf32>
    tpu.vector_store %arg4[%c0_5, %c0_6], %7 {strides = array<i32>} : memref<16x384xf32, #tpu.memory_space<vmem>>, vector<16x384xf32>,
    return
  }
  func.func @transform_0(%arg0: i32) -> (i32, i32) {
    %c0_i32 = arith.constant 0 : i32
    %c0_i32_0 = arith.constant 0 : i32
    return %arg0, %c0_i32 : i32, i32
  }
  func.func @transform_1(%arg0: i32) -> (i32, i32) {
    %c0_i32 = arith.constant 0 : i32
    %c0_i32_0 = arith.constant 0 : i32
    %c0_i32_1 = arith.constant 0 : i32
    return %c0_i32, %c0_i32_0 : i32, i32
  }
  func.func @transform_2(%arg0: i32) -> (i32, i32) {
    %c0_i32 = arith.constant 0 : i32
    %c0_i32_0 = arith.constant 0 : i32
    %c0_i32_1 = arith.constant 0 : i32
    return %c0_i32, %c0_i32_0 : i32, i32
  }
  func.func @transform_3(%arg0: i32) -> (i32, i32) {
    %c0_i32 = arith.constant 0 : i32
    %c0_i32_0 = arith.constant 0 : i32
    return %arg0, %c0_i32 : i32, i32
  }
}

</mosaic_0001>

<bundles_post_ra>
// kernel: tpu_custom_call.1
= control target key start
LH: loop header
LB: loop body
LE: loop exit
PB: predicated region body
PF: predicated region fallthrough
CT: control target
= control target key end

     0   :  { %8 = vsyncpa [#allocation3], 0  ;;  %s228_s0 = inlined_call_operand.hbm [shape: u8[16,384], index: 0, kind: input, shape index: {}]   ;;  %s229_s1 = inlined_call_operand.vmem [shape: f32[1,384], index: 1, kind: input, shape index: {}]   ;;  %s230_s2 = inlined_call_operand.vmem [shape: f32[1,384], index: 2, kind: input, shape index: {}]   ;;  %s231_s3 = inlined_call_operand.hbm [shape: f32[16,384], index: 3, kind: output, shape index: {}]  }
   0x1   :  { %9 = vsyncpa [#allocation4], 0  ;;  %s172_s12 = smov [#allocation2]   ;;  %s124_s16 = scalar_lea.hbm %s228_s0, 192 }
   0x2   :  { %s15_s13 = sshll.u32 %s172_s12, 4  ;;  %p125_p0 = scmp.ne.s32.totalorder %s228_s0, %s124_s16  ;;  %s16_s13 = int_to_ptr.vmem [resolvable:$true] %s15_s13 }
   0x3   :  { %p128_p1 = scmp.lt.u32.totalorder %s124_s16, %s228_s0 }
   0x5   :  { %p130_p2 = pnand %p128_p1, %p125_p0 }
   0x7   :  { %133 = shalt.err (!%p130_p2)
}
   0x8   :  { %s134_s21 = scalar_lea.vmem %s16_s13, 192  ;;  %p139_p4 = scmp.lt.s32.totalorder %s16_s13, %s16_s13 }
   0x9   :  { %p135_p3 = scmp.ne.s32.totalorder %s16_s13, %s134_s21  ;;  %p140_p5 = scmp.lt.s32.totalorder %s134_s21, %s134_s21 }
   0xb   :  { %p141_p6 = por %p140_p5, %p139_p4 }
   0xd   :  { %p142_p7 = pnand %p141_p6, %p135_p3 }
   0xf   :  { %145 = shalt.err (!%p142_p7)
}
  0x10   :  { %s173_s22 = smov 96   ;;  %s174_s23 = smov 6  }
  0x11   :  { %21 = dma.hbm_to_vmem [thread:$0]  %s228_s0, 192, %s16_s13, [#allocation3], %s173_s22, %s173_s22, %s174_s23  }
  0x12   :  { %168 = dma.done.wait [#allocation3], 192  }
  0x13   :  { %169 = vsyncadd [#allocation3], 4294967104  ;;  %v51_v0 = vlaneseq  ;;  %v29_v5 = vld [vmem:[#allocation2] sm:$0x3f]  ;;  %v30_v10 = vld [vmem:[#allocation2 + $0x6] sm:$0x3f] }
  0x14   :  { %v49_v6 = vld [vmem:[%s229_s1] sm:$0x7]  ;;  %v31_v8 = vunpack.c.0.s8 %v29_v5  ;;  %v32_v9 = vunpack.c.1.s8 %v29_v5  ;;  %v33_v13 = vunpack.c.2.s8 %v29_v5  ;;  %v34_v17 = vunpack.c.0.s8 %v30_v10  ;;  %s175_s0 = smov [#allocation5]  }
  0x15   :  { %v52_v1 = vshrl.u32 %v51_v0, 7  ;;  %v72_v7 = vld [vmem:[%s230_s2] sm:$0x7]  ;;  %v35_v20 = vunpack.c.1.s8 %v30_v10  ;;  %v36_v21 = vunpack.c.2.s8 %v30_v10  ;;  %s106_s1 = sshll.u32 %s175_s0, 4  ;;  %s107_s1 = int_to_ptr.vmem [resolvable:$true] %s106_s1 }
  0x16   :  { %v37_v14 = vand.u32 255, %v31_v8  ;;  %v38_v15 = vand.u32 255, %v32_v9  ;;  %v39_v18 = vand.u32 255, %v33_v13  ;;  %v40_v25 = vand.u32 255, %v34_v17  ;;  %s146_s2 = scalar_lea.vmem %s107_s1, 768  ;;  %p151_p9 = scmp.lt.s32.totalorder %s107_s1, %s107_s1 }
  0x17   :  { %v53_v2 = vsub.s32 0, %v52_v1  ;;  %v57_v3 = vsub.s32 1, %v52_v1  ;;  %v61_v4 = vsub.s32 2, %v52_v1  ;;  %v41_v28 = vand.u32 255, %v35_v20  ;;  %p147_p8 = scmp.ne.s32.totalorder %s107_s1, %s146_s2  ;;  %p152_p10 = scmp.lt.s32.totalorder %s146_s2, %s146_s2 }
  0x18   :  { %v43_v22 = vcvt.s32.f32 %v37_v14  ;;  %v44_v23 = vcvt.s32.f32 %v38_v15  ;;  %v45_v26 = vcvt.s32.f32 %v39_v18  ;;  %v42_v29 = vand.u32 255, %v36_v21 }
  0x19   :  { %v54_v11 = vrot.slane %v49_v6, %v53_v2  ;;  %v77_v12 = vrot.slane %v72_v7, %v53_v2  ;;  %v58_v16 = vrot.slane %v49_v6, %v57_v3  ;;  %v62_v19 = vrot.slane %v49_v6, %v61_v4  ;;  %p153_p11 = por %p152_p10, %p151_p9 }
  0x1a   :  { %v81_v24 = vrot.slane %v72_v7, %v57_v3  ;;  %v85_v27 = vrot.slane %v72_v7, %v61_v4  ;;  %v46_v32 = vcvt.s32.f32 %v40_v25  ;;  %v47_v34 = vcvt.s32.f32 %v41_v28 }
  0x1b   :  { %v66_v30 = vsub.f32 %v43_v22, %v54_v11  ;;  %v67_v31 = vsub.f32 %v44_v23, %v58_v16  ;;  %v68_v33 = vsub.f32 %v45_v26, %v62_v19  ;;  %v48_v35 = vcvt.s32.f32 %v42_v29  ;;  %p154_p12 = pnand %p153_p11, %p147_p8 }
  0x1c   :  { %v69_v38 = vsub.f32 %v46_v32, %v54_v11  ;;  %v70_v40 = vsub.f32 %v47_v34, %v58_v16 }
  0x1d   :  { %v89_v36 = vmul.f32 %v77_v12, %v66_v30  ;;  %v90_v37 = vmul.f32 %v81_v24, %v67_v31  ;;  %v91_v39 = vmul.f32 %v85_v27, %v68_v33  ;;  %v71_v41 = vsub.f32 %v48_v35, %v62_v19 }
  0x1e   :  { %v92_v42 = vmul.f32 %v77_v12, %v69_v38  ;;  %v93_v43 = vmul.f32 %v81_v24, %v70_v40 }
  0x1f   :  { %95 = vst [vmem:[#allocation5] sm:$0xff] %v89_v36  ;;  %96 = vst [vmem:[#allocation5 + $0x8] sm:$0xff] %v90_v37  ;;  %v94_v44 = vmul.f32 %v85_v27, %v71_v41 }
  0x20   :  { %97 = vst [vmem:[#allocation5 + $0x10] sm:$0xff] %v91_v39  ;;  %98 = vst [vmem:[#allocation5 + $0x18] sm:$0xff] %v92_v42 }
  0x21   :  { %99 = vst [vmem:[#allocation5 + $0x20] sm:$0xff] %v93_v43  ;;  %100 = vst [vmem:[#allocation5 + $0x28] sm:$0xff] %v94_v44 }
  0x22   :  { %157 = shalt.err (!%p154_p12)
}
  0x23   :  { %s158_s5 = scalar_lea.hbm %s231_s3, 768 }
  0x24   :  { %p159_p13 = scmp.ne.s32.totalorder %s231_s3, %s158_s5  ;;  %p162_p0 = scmp.lt.u32.totalorder %s158_s5, %s231_s3 }
  0x26   :  { %p164_p1 = pnand %p162_p0, %p159_p13 }
  0x28   :  { %167 = shalt.err (!%p164_p1)
}
  0x29   :  { %s176_s10 = smov 384   ;;  %s177_s11 = smov 24  }
  0x2a   :  { %112 = dma.vmem_to_hbm [thread:$0]  %s107_s1, 768, %s231_s3, [#allocation4], %s176_s10, %s176_s10, %s177_s11  }
  0x2b   :  { %170 = dma.done.wait [#allocation4], 768  }
  0x2c   :  { %171 = vsyncadd [#allocation4], 4294966528 }
  0x2d   :  { %116 = vsyncpa [#allocation3], 1 }
  0x2e   :  { %117 = vsyncpa [#allocation4], 1 }

</bundles_post_ra>
